<compile_context>
chip_gen: v7x
topology: tpu7x:2x2x1
jax: 0.10.0
libtpu: 0.0.40
codegen_flags: <defaults>
</compile_context>

<pallas_src>
import functools

import jax
import jax.numpy as jnp
from jax.experimental import pallas as pl
from jax.experimental.pallas import tpu as pltpu


def _triplet_rowloss_kernel(a_ref, p_ref, n_ref, o_ref, *,
                            margin, p, swap, total_n, tile_n):
    """One grid step: per-row hinge losses for a (tile_n, D) tile -> (tile_n, 1)."""
    i = pl.program_id(0)

    a = a_ref[...].astype(jnp.float32)
    pos = p_ref[...].astype(jnp.float32)
    neg = n_ref[...].astype(jnp.float32)

    eps = 1e-6  # matches torch.nn.functional.pairwise_distance default eps

    if p == 2:
        # squared L2: sum of squares directly (no sqrt -> square round trip)
        ap = a - pos + eps
        an = a - neg + eps
        if swap:
            pn = pos - neg + eps
            d_ap = jnp.sum(ap * ap, axis=1, keepdims=True)
            d_an = jnp.sum(an * an, axis=1, keepdims=True)
            d_pn = jnp.sum(pn * pn, axis=1, keepdims=True)
            hinge_arg = d_ap - jnp.minimum(d_an, d_pn) + margin
        else:
            # fuse the two distances into a single cross-lane reduction (XLU)
            hinge_arg = jnp.sum(ap * ap - an * an, axis=1, keepdims=True) + margin
    else:
        pf = float(p)

        def pdist_sq(x, y):
            d = jnp.power(jnp.sum(jnp.power(jnp.abs(x - y + eps), pf),
                                  axis=1, keepdims=True), 1.0 / pf)
            return d * d

        d_ap = pdist_sq(a, pos)
        d_an = pdist_sq(a, neg)
        if swap:
            d_an = jnp.minimum(d_an, pdist_sq(pos, neg))
        hinge_arg = d_ap - d_an + margin

    losses = jnp.maximum(hinge_arg, 0.0)  # (tile_n, 1)

    # Mask rows beyond N (partial last tile / padded output rows) to zero so the
    # wrapper-side reduction is exact even when tile_n does not divide N.
    row = jax.lax.broadcasted_iota(jnp.int32, losses.shape, 0) + i * tile_n
    losses = jnp.where(row < total_n, losses, 0.0)

    o_ref[...] = losses


def _pick_tile_n(n_rows, d, in_itemsize, budget_bytes=12 * 1024 * 1024):
    """Pick a sublane-aligned row tile sized against the scoped-VMEM budget.

    Per step the pipeline double-buffers 3 input tiles (tile_n, D) plus one
    (tile_n, 1) f32 output tile.
    """
    per_row = 2 * (3 * d * in_itemsize + 4)
    t = budget_bytes // max(per_row, 1)
    t = min(t, 2048)                     # diminishing returns past ~2K rows
    t = max(8, (t // 8) * 8)             # multiple of 8 (sublane constraint)
    needed = max(8, ((n_rows + 7) // 8) * 8)
    return int(min(t, needed))


def triplet_margin_loss_with_swap(anchor, positive, negative, *,
                                  margin=1.0, p=2, reduction='mean', swap=False,
                                  tile_n=None):
    """Pallas TPU implementation of CustomTripletMarginLossWithSwap.forward."""
    assert anchor.shape == positive.shape == negative.shape
    assert anchor.ndim == 2
    N, D = anchor.shape

    in_itemsize = jnp.dtype(anchor.dtype).itemsize
    if tile_n is None:
        tile_n = _pick_tile_n(N, D, in_itemsize)
    assert tile_n % 8 == 0

    num_tiles = pl.cdiv(N, tile_n)
    n_pad = num_tiles * tile_n

    kernel = functools.partial(_triplet_rowloss_kernel,
                               margin=float(margin), p=p, swap=bool(swap),
                               total_n=N, tile_n=tile_n)

    row_spec = pl.BlockSpec((tile_n, D), lambda i: (i, 0))

    cost = pl.CostEstimate(
        flops=int((9 if swap else 6) * N * D),
        transcendentals=0 if p == 2 else int(3 * N * D),
        bytes_accessed=int(3 * N * D * in_itemsize + n_pad * 4),
    )

    losses = pl.pallas_call(
        kernel,
        out_shape=jax.ShapeDtypeStruct((n_pad, 1), jnp.float32),
        grid_spec=pltpu.PrefetchScalarGridSpec(
            num_scalar_prefetch=0,
            grid=(num_tiles,),
            in_specs=[row_spec, row_spec, row_spec],
            out_specs=pl.BlockSpec((tile_n, 1), lambda i: (i, 0)),
        ),
        compiler_params=pltpu.CompilerParams(
            dimension_semantics=("parallel",),
            vmem_limit_bytes=32 * 1024 * 1024,
        ),
        cost_estimate=cost,
    )(anchor, positive, negative)

    if reduction == 'mean':
        return jnp.sum(losses) / float(N)
    elif reduction == 'sum':
        return jnp.sum(losses)
    else:  # 'none' -> per-row losses, shape (N,)
        return losses[:N, 0]


def _reference(anchor, positive, negative, *, margin=1.0, p=2,
               reduction='mean', swap=False):
    eps = 1e-6

    def pdist_sq(x, y):
        d = jnp.sum(jnp.abs(x - y + eps) ** p, axis=1) ** (1.0 / p)
        return d ** 2

    d_ap = pdist_sq(anchor, positive)
    d_an = pdist_sq(anchor, negative)
    if swap:
        d_an = jnp.minimum(d_an, pdist_sq(positive, negative))
    losses = jnp.maximum(d_ap - d_an + margin, 0.0)
    if reduction == 'mean':
        return losses.mean()
    elif reduction == 'sum':
        return losses.sum()
    return losses


if __name__ == "__main__":
    key = jax.random.PRNGKey(0)
    k1, k2, k3 = jax.random.split(key, 3)
    N, D = 8, 32
    anchor = jax.random.normal(k1, (N, D), dtype=jnp.float32)
    positive = jax.random.normal(k2, (N, D), dtype=jnp.float32)
    negative = jax.random.normal(k3, (N, D), dtype=jnp.float32)

    # Default module config: margin=1.0, p=2, reduction='mean', swap=False
    out = triplet_margin_loss_with_swap(anchor, positive, negative,
                                        margin=1.0, p=2,
                                        reduction='mean', swap=False)
    jax.block_until_ready(out)
    ref = _reference(anchor, positive, negative, margin=1.0, p=2,
                     reduction='mean', swap=False)
    assert jnp.allclose(out, ref, rtol=1e-5, atol=1e-5), (out, ref)

    # The module's namesake feature: swap=True.
    out_swap = triplet_margin_loss_with_swap(anchor, positive, negative,
                                             margin=1.0, p=2,
                                             reduction='mean', swap=True)
    jax.block_until_ready(out_swap)
    ref_swap = _reference(anchor, positive, negative, margin=1.0, p=2,
                          reduction='mean', swap=True)
    assert jnp.allclose(out_swap, ref_swap, rtol=1e-5, atol=1e-5), (out_swap, ref_swap)

    # N not divisible by tile_n (exercises the partial-tile masking path) and
    # reduction='sum' + 'none'.
    k4, k5, k6 = jax.random.split(jax.random.PRNGKey(1), 3)
    N2 = 20
    a2 = jax.random.normal(k4, (N2, D), dtype=jnp.float32)
    p2 = jax.random.normal(k5, (N2, D), dtype=jnp.float32)
    n2 = jax.random.normal(k6, (N2, D), dtype=jnp.float32)
    out_sum = triplet_margin_loss_with_swap(a2, p2, n2, margin=0.5, p=2,
                                            reduction='sum', swap=True, tile_n=8)
    jax.block_until_ready(out_sum)
    ref_sum = _reference(a2, p2, n2, margin=0.5, p=2, reduction='sum', swap=True)
    assert jnp.allclose(out_sum, ref_sum, rtol=1e-5, atol=1e-5), (out_sum, ref_sum)

    out_none = triplet_margin_loss_with_swap(a2, p2, n2, margin=1.0, p=2,
                                             reduction='none', swap=False, tile_n=8)
    jax.block_until_ready(out_none)
    ref_none = _reference(a2, p2, n2, margin=1.0, p=2, reduction='none', swap=False)
    assert out_none.shape == (N2,)
    assert jnp.allclose(out_none, ref_none, rtol=1e-5, atol=1e-5)

    print("KERNEL_OK")
</pallas_src>

<mosaic_0001>
module attributes {stable_mosaic.version = 11 : i64} {
  func.func @_triplet_rowloss_kernel(%arg0: i32, %arg1: memref<8x32xf32, #tpu.memory_space<vmem>>, %arg2: memref<8x32xf32, #tpu.memory_space<vmem>>, %arg3: memref<8x32xf32, #tpu.memory_space<vmem>>, %arg4: memref<8x1xf32, #tpu.memory_space<vmem>>) attributes {dimension_semantics = [#tpu.dimension_semantics<parallel>], iteration_bounds = array<i64: 1>, scalar_prefetch = 0 : i64, scratch_operands = 0 : i64, tpu.core_type = #tpu.core_type<tc>, window_params = [{transform_indices = @transform_0, window_bounds = array<i64: 8, 32>}, {transform_indices = @transform_1, window_bounds = array<i64: 8, 32>}, {transform_indices = @transform_2, window_bounds = array<i64: 8, 32>}, {transform_indices = @transform_3, window_bounds = array<i64: 8, 1>}]} {
    %c0 = arith.constant 0 : index
    %c0_0 = arith.constant 0 : index
    %0 = vector.load %arg1[%c0, %c0_0] : memref<8x32xf32, #tpu.memory_space<vmem>>, vector<8x32xf32>
    %c0_1 = arith.constant 0 : index
    %c0_2 = arith.constant 0 : index
    %1 = vector.load %arg2[%c0_1, %c0_2] : memref<8x32xf32, #tpu.memory_space<vmem>>, vector<8x32xf32>
    %c0_3 = arith.constant 0 : index
    %c0_4 = arith.constant 0 : index
    %2 = vector.load %arg3[%c0_3, %c0_4] : memref<8x32xf32, #tpu.memory_space<vmem>>, vector<8x32xf32>
    %3 = arith.subf %0, %1 : vector<8x32xf32>
    %cst = arith.constant 9.99999997E-7 : f32
    %4 = vector.broadcast %cst : f32 to vector<8x32xf32>
    %5 = arith.addf %3, %4 : vector<8x32xf32>
    %6 = arith.subf %0, %2 : vector<8x32xf32>
    %cst_5 = arith.constant 9.99999997E-7 : f32
    %7 = vector.broadcast %cst_5 : f32 to vector<8x32xf32>
    %8 = arith.addf %6, %7 : vector<8x32xf32>
    %9 = arith.mulf %5, %5 : vector<8x32xf32>
    %10 = arith.mulf %8, %8 : vector<8x32xf32>
    %11 = arith.subf %9, %10 : vector<8x32xf32>
    %cst_6 = arith.constant dense<0.000000e+00> : vector<8xf32>
    %12 = vector.multi_reduction <add>, %11, %cst_6 [1] : vector<8x32xf32> to vector<8xf32>
    %13 = vector.shape_cast %12 : vector<8xf32> to vector<8x1xf32>
    %cst_7 = arith.constant 1.000000e+00 : f32
    %14 = vector.broadcast %cst_7 : f32 to vector<8x1xf32>
    %15 = arith.addf %13, %14 : vector<8x1xf32>
    %cst_8 = arith.constant 0.000000e+00 : f32
    %16 = vector.broadcast %cst_8 : f32 to vector<8x1xf32>
    %17 = arith.maximumf %15, %16 : vector<8x1xf32>
    %18 = tpu.iota {dimensions = array<i32: 0>} : vector<8x1xi32>
    %c8_i32 = arith.constant 8 : i32
    %19 = arith.muli %arg0, %c8_i32 : i32
    %20 = vector.broadcast %19 : i32 to vector<8x1xi32>
    %21 = arith.addi %18, %20 : vector<8x1xi32>
    %c8_i32_9 = arith.constant 8 : i32
    %22 = vector.broadcast %c8_i32_9 : i32 to vector<8x1xi32>
    %23 = arith.cmpi slt, %21, %22 : vector<8x1xi32>
    %cst_10 = arith.constant 0.000000e+00 : f32
    %24 = vector.broadcast %cst_10 : f32 to vector<8x1xf32>
    %25 = arith.select %23, %17, %24 : vector<8x1xi1>, vector<8x1xf32>
    %c0_11 = arith.constant 0 : index
    %c0_12 = arith.constant 0 : index
    %26 = vector.load %arg4[%c0_11, %c0_12] : memref<8x1xf32, #tpu.memory_space<vmem>>, vector<8x1xf32>
    tpu.vector_store %arg4[%c0_11, %c0_12], %25 {strides = array<i32>} : memref<8x1xf32, #tpu.memory_space<vmem>>, vector<8x1xf32>,
    return
  }
  func.func @transform_0(%arg0: i32) -> (i32, i32) {
    %c0_i32 = arith.constant 0 : i32
    %c0_i32_0 = arith.constant 0 : i32
    return %arg0, %c0_i32 : i32, i32
  }
  func.func @transform_1(%arg0: i32) -> (i32, i32) {
    %c0_i32 = arith.constant 0 : i32
    %c0_i32_0 = arith.constant 0 : i32
    return %arg0, %c0_i32 : i32, i32
  }
  func.func @transform_2(%arg0: i32) -> (i32, i32) {
    %c0_i32 = arith.constant 0 : i32
    %c0_i32_0 = arith.constant 0 : i32
    return %arg0, %c0_i32 : i32, i32
  }
  func.func @transform_3(%arg0: i32) -> (i32, i32) {
    %c0_i32 = arith.constant 0 : i32
    %c0_i32_0 = arith.constant 0 : i32
    return %arg0, %c0_i32 : i32, i32
  }
}

</mosaic_0001>

<bundles_post_ra>
// kernel: tpu_custom_call.1
= control target key start
LH: loop header
LB: loop body
LE: loop exit
PB: predicated region body
PF: predicated region fallthrough
CT: control target
= control target key end

     0   :  { %8 = vsyncpa [#allocation3], 0  ;;  %s215_s0 = inlined_call_operand.hbm [shape: f32[8,32], index: 0, kind: input, shape index: {}]   ;;  %s216_s1 = inlined_call_operand.hbm [shape: f32[8,32], index: 1, kind: input, shape index: {}]   ;;  %s217_s2 = inlined_call_operand.hbm [shape: f32[8,32], index: 2, kind: input, shape index: {}]   ;;  %s218_s3 = inlined_call_operand.vmem [shape: f32[8,1], index: 3, kind: output, shape index: {}]  }
   0x1   :  { %9 = vsyncpa [#allocation5], 0  ;;  %s153_s12 = smov [#allocation4]   ;;  %s154_s14 = smov [#allocation2]  }
   0x2   :  { %s26_s13 = sshll.u32 %s153_s12, 4  ;;  %s16_s15 = sshll.u32 %s154_s14, 4  ;;  %s27_s13 = int_to_ptr.vmem [resolvable:$true] %s26_s13  ;;  %s17_s15 = int_to_ptr.vmem [resolvable:$true] %s16_s15 }
   0x3   :  { %s83_s18 = scalar_lea.hbm %s216_s1, 128 }
   0x4   :  { %p84_p0 = scmp.ne.s32.totalorder %s216_s1, %s83_s18  ;;  %p87_p1 = scmp.lt.u32.totalorder %s83_s18, %s216_s1 }
   0x6   :  { %p89_p2 = pnand %p87_p1, %p84_p0 }
   0x8   :  { %92 = shalt.err (!%p89_p2)
}
   0x9   :  { %s93_s23 = scalar_lea.vmem %s27_s13, 128  ;;  %p98_p4 = scmp.lt.s32.totalorder %s27_s13, %s27_s13 }
   0xa   :  { %p94_p3 = scmp.ne.s32.totalorder %s27_s13, %s93_s23  ;;  %p99_p5 = scmp.lt.s32.totalorder %s93_s23, %s93_s23 }
   0xc   :  { %p100_p6 = por %p99_p5, %p98_p4 }
   0xe   :  { %p101_p7 = pnand %p100_p6, %p94_p3 }
  0x10   :  { %104 = shalt.err (!%p101_p7)
}
  0x11   :  { %29 = dma.hbm_to_vmem [thread:$0]  %s216_s1, 128, %s27_s13, [#allocation5]  }
  0x12   :  { %s105_s28 = scalar_lea.hbm %s215_s0, 128 }
  0x13   :  { %p106_p8 = scmp.ne.s32.totalorder %s215_s0, %s105_s28  ;;  %p109_p9 = scmp.lt.u32.totalorder %s105_s28, %s215_s0 }
  0x15   :  { %p111_p10 = pnand %p109_p9, %p106_p8 }
  0x17   :  { %114 = shalt.err (!%p111_p10)
}
  0x18   :  { %s115_s6 = scalar_lea.vmem %s17_s15, 128  ;;  %p120_p12 = scmp.lt.s32.totalorder %s17_s15, %s17_s15 }
  0x19   :  { %p116_p11 = scmp.ne.s32.totalorder %s17_s15, %s115_s6  ;;  %p121_p13 = scmp.lt.s32.totalorder %s115_s6, %s115_s6 }
  0x1b   :  { %p122_p0 = por %p121_p13, %p120_p12 }
  0x1d   :  { %p123_p1 = pnand %p122_p0, %p116_p11 }
  0x1f   :  { %126 = shalt.err (!%p123_p1)
}
  0x20   :  { %19 = dma.hbm_to_vmem [thread:$0]  %s215_s0, 128, %s17_s15, [#allocation3]  }
  0x21   :  { %s155_s8 = smov [#allocation6]   ;;  %s127_s12 = scalar_lea.hbm %s217_s2, 128 }
  0x22   :  { %s36_s9 = sshll.u32 %s155_s8, 4  ;;  %p128_p2 = scmp.ne.s32.totalorder %s217_s2, %s127_s12  ;;  %s37_s9 = int_to_ptr.vmem [resolvable:$true] %s36_s9 }
  0x23   :  { %p131_p3 = scmp.lt.u32.totalorder %s127_s12, %s217_s2 }
  0x25   :  { %p133_p4 = pnand %p131_p3, %p128_p2 }
  0x27   :  { %136 = shalt.err (!%p133_p4)
}
  0x28   :  { %s137_s18 = scalar_lea.vmem %s37_s9, 128  ;;  %p142_p6 = scmp.lt.s32.totalorder %s37_s9, %s37_s9 }
  0x29   :  { %p138_p5 = scmp.ne.s32.totalorder %s37_s9, %s137_s18  ;;  %p143_p7 = scmp.lt.s32.totalorder %s137_s18, %s137_s18 }
  0x2b   :  { %p144_p8 = por %p143_p7, %p142_p6 }
  0x2d   :  { %p145_p9 = pnand %p144_p8, %p138_p5 }
  0x2f   :  { %148 = shalt.err (!%p145_p9)
}
  0x30   :  { %39 = dma.hbm_to_vmem [thread:$0]  %s217_s2, 128, %s37_s9, [#allocation5]  }
  0x31   :  { %149 = dma.done.wait [#allocation3], 128  }
  0x32   :  { %150 = vsyncadd [#allocation3], 4294967168 }
  0x33   :  { %151 = dma.done.wait [#allocation5], 256  }
  0x34   :  { %152 = vsyncadd [#allocation5], 4294967040  ;;  %v49_v0 = vld [vmem:[#allocation2] sm:$0xff]  ;;  %v50_v1 = vld [vmem:[#allocation4] sm:$0xff]  ;;  %vm59_vm0 = vcmask 261120   ;;  %vm72_vm1 = vcmask 7168  }
  0x35   :  { %v51_v2 = vld [vmem:[#allocation6] sm:$0xff]  ;;  %v52_v3 = vsub.f32 %v49_v0, %v50_v1 }
  0x36   :  { %v54_v4 = vsub.f32 %v49_v0, %v51_v2 }
  0x37   :  { %v53_v5 = vadd.f32 1e-06, %v52_v3 }
  0x38   :  { %v55_v6 = vadd.f32 1e-06, %v54_v4 }
  0x39   :  { %v56_v7 = vmul.f32 %v53_v5, %v53_v5 }
  0x3a   :  { %v57_v8 = vmul.f32 %v55_v6, %v55_v6 }
  0x3c   :  { %v58_v9 = vsub.f32 %v56_v7, %v57_v8 }
  0x3e   :  { %v60_v10 = vsel %vm59_vm0, %v58_v9, 0.0 }
  0x3f   :  { %61 = vadd.xlane.f32.xlu0 %v60_v10 }
  0xcc   :  { %v62_v11 = vpop.xlane.xlu0 %61 }
  0xcd   :  { %v63_v12 = vadd.f32 1.0, %v62_v11 }
  0xcf   :  { %v64_v13 = vmax.f32 %v63_v12, 0.0 }
  0xd1   :  { %73 = vst.msk [vmem:[%s218_s3] sm:$0xff] %vm72_vm1, %v64_v13 }
  0xd2   :  { %78 = vsyncpa [#allocation3], 1 }
  0xd3   :  { %79 = vsyncpa [#allocation5], 1 }

</bundles_post_ra>
